<compile_context>
chip_gen: v7x
topology: tpu7x:2x2x1
jax: 0.10.0
libtpu: 0.0.40
codegen_flags: <defaults>
</compile_context>

<pallas_src>
import functools

import jax
import jax.numpy as jnp
from jax import lax
from jax.experimental import pallas as pl
from jax.experimental.pallas import tpu as pltpu


def hrrp_residual_kernel(
    x_ref,      # (tb, Cin, L)      input block (NCL), f32
    w1c_ref,    # (2*Cout, 3*Cin)   fused conv1 taps + 1x1 shortcut rows, bf16
    w2_ref,     # (Cout, 3*Cout)    fused conv2 taps, bf16
    b3_ref,     # (Cout, 1)         shortcut bias, f32
    bn1s_ref,   # (Cout, 1)         folded BN1 scale, f32
    bn1b_ref,   # (Cout, 1)         folded BN1 shift (conv1 bias folded in), f32
    bn2s_ref,   # (Cout, 1)         folded BN2 scale, f32
    bn2b_ref,   # (Cout, 1)         folded BN2 shift (conv2 bias folded in), f32
    sew1_ref,   # (H, Cout)         SE MLP W1 (no bias), f32
    sew2_ref,   # (Cout, H)         SE MLP W2 (no bias), f32
    out_ref,    # (tb, Cout, L)     output block (NCL), f32
    *,
    mxu_dtype,
):
    tb, _, L = x_ref.shape
    cout = out_ref.shape[1]

    def taps(v):
        # (C, L) -> (3*C, L) im2col for a k=3, pad=1 "same" conv.  The +/-1 taps are
        # zero-padded lane shifts (static slice + concat along lanes): exact boundary
        # handling, no masks, no cross-sample wraparound, interpreter-safe.
        c = v.shape[0]
        zcol = jnp.zeros((c, 1), v.dtype)
        vm1 = jnp.concatenate([zcol, v[:, : L - 1]], axis=1)   # v[:, l-1]
        vp1 = jnp.concatenate([v[:, 1:], zcol], axis=1)        # v[:, l+1]
        return jnp.concatenate([vm1, v, vp1], axis=0)

    def conv3x(v, w_ref):
        # Single fused matmul (M, 3*C) @ (3*C, L) with L on lanes; bf16 cast happens
        # once on the (C, L) source so the tap build moves half the data.
        cols = taps(v.astype(mxu_dtype))
        return jnp.dot(w_ref[...], cols, preferred_element_type=jnp.float32)

    def one_sample(s):
        x_s = x_ref[s]                                          # (Cin, L) f32

        # conv1 + folded 1x1 shortcut in ONE MXU pass -> (2*Cout, L)
        r1 = conv3x(x_s, w1c_ref)
        y = jnp.maximum(r1[:cout] * bn1s_ref[...] + bn1b_ref[...], 0.0)
        sc = r1[cout:] + b3_ref[...]                            # 1x1 shortcut branch

        # conv2 -> bn2
        y2 = conv3x(y, w2_ref) * bn2s_ref[...] + bn2b_ref[...]

        # DualSE: avg & max pool over L, shared MLP once on the stacked pools,
        # sigmoid gate.  (Dropout is identity in eval mode.)
        pooled = jnp.concatenate(
            [jnp.mean(y2, axis=1, keepdims=True),
             jnp.max(y2, axis=1, keepdims=True)], axis=1)       # (Cout, 2)
        h = jnp.maximum(
            jnp.dot(sew1_ref[...], pooled, preferred_element_type=jnp.float32),
            0.0)                                                # (H, 2)
        a = jnp.dot(sew2_ref[...], h, preferred_element_type=jnp.float32)  # (Cout, 2)
        attn = jax.nn.sigmoid(a[:, 0:1] + a[:, 1:2])            # (Cout, 1)

        # gate + residual add + final ReLU
        out_ref[s] = jnp.maximum(y2 * attn + sc, 0.0)

    # tb is a small static block size (<= 8); a static loop keeps the trace tiny.
    for s in range(tb):
        one_sample(s)


def _tpu_vmem_bytes():
    try:
        return int(pltpu.get_tpu_info().vmem_capacity_bytes)
    except Exception:
        return 64 << 20            # conservative (v7x-sized) fallback


def _pick_batch_tile(B, L, cin, cout):
    vmem = _tpu_vmem_bytes()
    # Live-block budget ~ vmem/10: ~12.8 MiB on 128 MiB chips (v5e/v6e), ~6.4 MiB on
    # v7x (64 MiB physical), leaving room for the double-buffered in/out blocks.
    budget = max(2 << 20, vmem // 10)
    per_sample = 4 * L * (4 * cin + 10 * cout)   # rough live f32 bytes per sample
    tb = max(1, min(8, budget // max(per_sample, 1)))
    # Guarantee >= min(B, 4) grid steps so the BlockSpec pipeline overlaps DMA with
    # compute and v7x's two TensorCores both get work.
    tb = min(tb, max(1, B // max(1, min(B, 4))))
    vmem_limit = int(min(64 << 20, (vmem * 3) // 4))   # <= 48 MiB on v7x
    return tb, vmem_limit


def hrrp_residual_pallas(x_ncl, params, *, mxu_dtype=jnp.bfloat16):
    """HRRP_Residual forward (eval mode). x_ncl: (B, Cin, L) f32 -> (B, Cout, L) f32."""
    B, Cin, L = x_ncl.shape
    Cout = params["w1"].shape[0]
    H = params["se_w1"].shape[0]
    f32 = jnp.float32

    # ---- host-side parameter prep (tiny; constant-folded under jit) ----
    # Fused k=3 taps: column (k*Cin + c) <- w[o, c, k] so the im2col rows are
    # [x[l-1] | x[l] | x[l+1]] stacked over channels.
    w1m = jnp.transpose(params["w1"], (0, 2, 1)).reshape(Cout, 3 * Cin)
    # Fold the 1x1 shortcut into the same matmul: extra Cout rows reading only the
    # centre tap.
    zpad = jnp.zeros((Cout, Cin), w1m.dtype)
    w3row = jnp.concatenate([zpad, params["w3"][:, :, 0], zpad], axis=1)
    w1c = jnp.concatenate([w1m, w3row], axis=0).astype(mxu_dtype)        # (2*Cout, 3*Cin)
    w2m = jnp.transpose(params["w2"], (0, 2, 1)).reshape(Cout, 3 * Cout).astype(mxu_dtype)

    b3 = params["b3"].reshape(Cout, 1).astype(f32)
    # bn(conv + b) = conv*scale + (shift + b*scale): fold conv biases into shifts.
    bn1s = params["bn1_scale"].reshape(Cout, 1).astype(f32)
    bn1b = (params["bn1_shift"] + params["b1"] * params["bn1_scale"]).reshape(Cout, 1).astype(f32)
    bn2s = params["bn2_scale"].reshape(Cout, 1).astype(f32)
    bn2b = (params["bn2_shift"] + params["b2"] * params["bn2_scale"]).reshape(Cout, 1).astype(f32)
    sew1 = params["se_w1"].astype(f32)        # (H, Cout), used un-transposed (left mult)
    sew2 = params["se_w2"].astype(f32)        # (Cout, H)

    # Data stays NCL end-to-end: no layout transposes, L on the lane axis.
    x = x_ncl.astype(f32)

    tb, vmem_limit = _pick_batch_tile(B, L, Cin, Cout)
    Bp = int(pl.cdiv(B, tb)) * tb
    if Bp != B:
        # Pad the batch instead of shrinking tb to a divisor of B (keeps blocks large
        # and the grid balanced); padded rows are sliced off below.
        x = jnp.concatenate([x, jnp.zeros((Bp - B, Cin, L), f32)], axis=0)
    grid = (Bp // tb,)

    flops = int(Bp * L * 2 * (2 * Cout * 3 * Cin + Cout * 3 * Cout)
                + Bp * 2 * 2 * (2 * H * Cout))
    bytes_accessed = int(4 * Bp * L * (Cin + Cout)
                         + 2 * (2 * Cout * 3 * Cin + Cout * 3 * Cout)
                         + 4 * Cout * (5 + 2 * H))
    transcendentals = int(Bp * Cout)

    const = lambda i: (0, 0)

    out = pl.pallas_call(
        functools.partial(hrrp_residual_kernel, mxu_dtype=mxu_dtype),
        out_shape=jax.ShapeDtypeStruct((Bp, Cout, L), f32),
        grid_spec=pltpu.PrefetchScalarGridSpec(
            num_scalar_prefetch=0,
            grid=grid,
            in_specs=[
                pl.BlockSpec((tb, Cin, L), lambda i: (i, 0, 0)),   # x block
                pl.BlockSpec((2 * Cout, 3 * Cin), const),          # conv1 + shortcut
                pl.BlockSpec((Cout, 3 * Cout), const),             # conv2
                pl.BlockSpec((Cout, 1), const),                    # b3
                pl.BlockSpec((Cout, 1), const),                    # bn1 scale
                pl.BlockSpec((Cout, 1), const),                    # bn1 shift (+b1)
                pl.BlockSpec((Cout, 1), const),                    # bn2 scale
                pl.BlockSpec((Cout, 1), const),                    # bn2 shift (+b2)
                pl.BlockSpec((H, Cout), const),                    # SE W1
                pl.BlockSpec((Cout, H), const),                    # SE W2
            ],
            out_specs=pl.BlockSpec((tb, Cout, L), lambda i: (i, 0, 0)),
        ),
        compiler_params=pltpu.CompilerParams(
            dimension_semantics=("parallel",),
            vmem_limit_bytes=vmem_limit,
        ),
        cost_estimate=pl.CostEstimate(
            flops=flops, transcendentals=transcendentals,
            bytes_accessed=bytes_accessed),
    )(x, w1c, w2m, b3, bn1s, bn1b, bn2s, bn2b, sew1, sew2)

    return out[:B]


# ------------------------- pure-JAX reference (NCL) -------------------------
def reference(x, p):
    def conv1d(x, w, b, pad):
        y = lax.conv_general_dilated(
            x, w, window_strides=(1,), padding=((pad, pad),),
            dimension_numbers=("NCH", "OIH", "NCH"))
        return y + b.reshape(1, -1, 1)

    def bn(x, scale, shift):
        return x * scale.reshape(1, -1, 1) + shift.reshape(1, -1, 1)

    y = jax.nn.relu(bn(conv1d(x, p["w1"], p["b1"].reshape(-1), 1),
                       p["bn1_scale"].reshape(-1), p["bn1_shift"].reshape(-1)))
    y = bn(conv1d(y, p["w2"], p["b2"].reshape(-1), 1),
           p["bn2_scale"].reshape(-1), p["bn2_shift"].reshape(-1))

    # DualSE (eval mode; dropout = identity)
    avg = jnp.mean(y, axis=-1)
    mx = jnp.max(y, axis=-1)
    mlp = lambda v: jnp.maximum(v @ p["se_w1"].T, 0.0) @ p["se_w2"].T
    attn = jax.nn.sigmoid(mlp(avg) + mlp(mx))
    y = y * attn[:, :, None]

    sc = conv1d(x, p["w3"], p["b3"].reshape(-1), 0)
    return jax.nn.relu(y + sc)


if __name__ == "__main__":
    B, Cin, Cout, L, reduction = 2, 4, 32, 16, 16
    H = Cout // reduction

    key = jax.random.PRNGKey(0)
    ks = jax.random.split(key, 16)

    def n(k, shape, scale=0.1):
        return (scale * jax.random.normal(k, shape)).astype(jnp.float32)

    # Conv / linear weights
    w1 = n(ks[0], (Cout, Cin, 3))
    b1 = n(ks[1], (1, 1, Cout))
    w2 = n(ks[2], (Cout, Cout, 3))
    b2 = n(ks[3], (1, 1, Cout))
    w3 = n(ks[4], (Cout, Cin, 1))
    b3 = n(ks[5], (1, 1, Cout))
    se_w1 = n(ks[6], (H, Cout), scale=0.2)
    se_w2 = n(ks[7], (Cout, H), scale=0.2)

    # BatchNorm (inference): fold gamma/beta/mean/var into scale & shift
    eps = 1e-5
    def bn_fold(kg, kb, km, kv):
        gamma = 1.0 + n(kg, (Cout,))
        beta = n(kb, (Cout,))
        mean = n(km, (Cout,))
        var = jax.random.uniform(kv, (Cout,), minval=0.5, maxval=1.5).astype(jnp.float32)
        scale = gamma / jnp.sqrt(var + eps)
        shift = beta - mean * scale
        return scale.reshape(1, 1, Cout), shift.reshape(1, 1, Cout)

    bn1_scale, bn1_shift = bn_fold(ks[8], ks[9], ks[10], ks[11])
    bn2_scale, bn2_shift = bn_fold(ks[12], ks[13], ks[14], ks[15])

    params = dict(
        w1=w1, b1=b1, w2=w2, b2=b2, w3=w3, b3=b3,
        bn1_scale=bn1_scale, bn1_shift=bn1_shift,
        bn2_scale=bn2_scale, bn2_shift=bn2_shift,
        se_w1=se_w1, se_w2=se_w2,
    )

    x = jax.random.normal(jax.random.PRNGKey(42), (B, Cin, L)).astype(jnp.float32)

    fwd = jax.jit(hrrp_residual_pallas)
    out = jax.block_until_ready(fwd(x, params))
    ref = jax.block_until_ready(reference(x, params))

    assert out.shape == (B, Cout, L), out.shape
    # bf16 MXU operands (f32 accumulation) -> tolerance looser than pure-f32.
    assert jnp.allclose(out, ref, atol=5e-2, rtol=5e-2), float(jnp.abs(out - ref).max())
    print("KERNEL_OK")
</pallas_src>

<mosaic_0001>
module attributes {stable_mosaic.version = 11 : i64} {
  func.func @hrrp_residual_kernel(%arg0: i32, %arg1: memref<1x4x16xf32, #tpu.memory_space<vmem>>, %arg2: memref<64x12xbf16, #tpu.memory_space<vmem>>, %arg3: memref<32x96xbf16, #tpu.memory_space<vmem>>, %arg4: memref<32x1xf32, #tpu.memory_space<vmem>>, %arg5: memref<32x1xf32, #tpu.memory_space<vmem>>, %arg6: memref<32x1xf32, #tpu.memory_space<vmem>>, %arg7: memref<32x1xf32, #tpu.memory_space<vmem>>, %arg8: memref<32x1xf32, #tpu.memory_space<vmem>>, %arg9: memref<2x32xf32, #tpu.memory_space<vmem>>, %arg10: memref<32x2xf32, #tpu.memory_space<vmem>>, %arg11: memref<1x32x16xf32, #tpu.memory_space<vmem>>) attributes {dimension_semantics = [#tpu.dimension_semantics<parallel>], iteration_bounds = array<i64: 2>, scalar_prefetch = 0 : i64, scratch_operands = 0 : i64, tpu.core_type = #tpu.core_type<tc>, window_params = [{transform_indices = @transform_0, window_bounds = array<i64: 1, 4, 16>}, {pipeline_mode = #tpu.pipeline_mode<synchronous>, transform_indices = @transform_1, window_bounds = array<i64: 64, 12>}, {pipeline_mode = #tpu.pipeline_mode<synchronous>, transform_indices = @transform_2, window_bounds = array<i64: 32, 96>}, {pipeline_mode = #tpu.pipeline_mode<synchronous>, transform_indices = @transform_3, window_bounds = array<i64: 32, 1>}, {pipeline_mode = #tpu.pipeline_mode<synchronous>, transform_indices = @transform_4, window_bounds = array<i64: 32, 1>}, {pipeline_mode = #tpu.pipeline_mode<synchronous>, transform_indices = @transform_5, window_bounds = array<i64: 32, 1>}, {pipeline_mode = #tpu.pipeline_mode<synchronous>, transform_indices = @transform_6, window_bounds = array<i64: 32, 1>}, {pipeline_mode = #tpu.pipeline_mode<synchronous>, transform_indices = @transform_7, window_bounds = array<i64: 32, 1>}, {pipeline_mode = #tpu.pipeline_mode<synchronous>, transform_indices = @transform_8, window_bounds = array<i64: 2, 32>}, {pipeline_mode = #tpu.pipeline_mode<synchronous>, transform_indices = @transform_9, window_bounds = array<i64: 32, 2>}, {transform_indices = @transform_10, window_bounds = array<i64: 1, 32, 16>}]} {
    %c0 = arith.constant 0 : index
    %c0_0 = arith.constant 0 : index
    %c0_1 = arith.constant 0 : index
    %0 = vector.load %arg1[%c0, %c0_0, %c0_1] : memref<1x4x16xf32, #tpu.memory_space<vmem>>, vector<1x4x16xf32>
    %1 = vector.shape_cast %0 : vector<1x4x16xf32> to vector<4x16xf32>
    %2 = arith.truncf %1 : vector<4x16xf32> to vector<4x16xbf16>
    %cst = arith.constant 0.000000e+00 : bf16
    %3 = vector.broadcast %cst : bf16 to vector<4x1xbf16>
    %4 = vector.extract_strided_slice %2 {offsets = [0, 0], sizes = [4, 15], strides = [1, 1]} : vector<4x16xbf16> to vector<4x15xbf16>
    %5 = tpu.concatenate %3, %4 in 1 : vector<4x1xbf16>, vector<4x15xbf16> -> vector<4x16xbf16>
    %6 = vector.extract_strided_slice %2 {offsets = [0, 1], sizes = [4, 15], strides = [1, 1]} : vector<4x16xbf16> to vector<4x15xbf16>
    %7 = tpu.concatenate %6, %3 in 1 : vector<4x15xbf16>, vector<4x1xbf16> -> vector<4x16xbf16>
    %8 = tpu.concatenate %5, %2, %7 in 0 : vector<4x16xbf16>, vector<4x16xbf16>, vector<4x16xbf16> -> vector<12x16xbf16>
    %c0_2 = arith.constant 0 : index
    %c0_3 = arith.constant 0 : index
    %9 = vector.load %arg2[%c0_2, %c0_3] : memref<64x12xbf16, #tpu.memory_space<vmem>>, vector<64x12xbf16>
    %cst_4 = arith.constant dense<0.000000e+00> : vector<64x16xf32>
    %10 = tpu.matmul %9, %8, %cst_4 {dimension_numbers = #tpu.dot_dimension_numbers<[1], [0], [0], [1], [0, 0, 1, 1], [], []>} : vector<64x12xbf16>, vector<12x16xbf16>, vector<64x16xf32> -> vector<64x16xf32>
    %11 = vector.extract_strided_slice %10 {offsets = [0, 0], sizes = [32, 16], strides = [1, 1]} : vector<64x16xf32> to vector<32x16xf32>
    %c0_5 = arith.constant 0 : index
    %c0_6 = arith.constant 0 : index
    %12 = vector.load %arg5[%c0_5, %c0_6] : memref<32x1xf32, #tpu.memory_space<vmem>>, vector<32x1xf32>
    %13 = vector.broadcast %12 : vector<32x1xf32> to vector<32x16xf32>
    %14 = arith.mulf %11, %13 : vector<32x16xf32>
    %c0_7 = arith.constant 0 : index
    %c0_8 = arith.constant 0 : index
    %15 = vector.load %arg6[%c0_7, %c0_8] : memref<32x1xf32, #tpu.memory_space<vmem>>, vector<32x1xf32>
    %16 = vector.broadcast %15 : vector<32x1xf32> to vector<32x16xf32>
    %17 = arith.addf %14, %16 : vector<32x16xf32>
    %cst_9 = arith.constant 0.000000e+00 : f32
    %18 = vector.broadcast %cst_9 : f32 to vector<32x16xf32>
    %19 = arith.maximumf %17, %18 : vector<32x16xf32>
    %20 = vector.extract_strided_slice %10 {offsets = [32, 0], sizes = [32, 16], strides = [1, 1]} : vector<64x16xf32> to vector<32x16xf32>
    %c0_10 = arith.constant 0 : index
    %c0_11 = arith.constant 0 : index
    %21 = vector.load %arg4[%c0_10, %c0_11] : memref<32x1xf32, #tpu.memory_space<vmem>>, vector<32x1xf32>
    %22 = vector.broadcast %21 : vector<32x1xf32> to vector<32x16xf32>
    %23 = arith.addf %20, %22 : vector<32x16xf32>
    %24 = arith.truncf %19 : vector<32x16xf32> to vector<32x16xbf16>
    %cst_12 = arith.constant 0.000000e+00 : bf16
    %25 = vector.broadcast %cst_12 : bf16 to vector<32x1xbf16>
    %26 = vector.extract_strided_slice %24 {offsets = [0, 0], sizes = [32, 15], strides = [1, 1]} : vector<32x16xbf16> to vector<32x15xbf16>
    %27 = tpu.concatenate %25, %26 in 1 : vector<32x1xbf16>, vector<32x15xbf16> -> vector<32x16xbf16>
    %28 = vector.extract_strided_slice %24 {offsets = [0, 1], sizes = [32, 15], strides = [1, 1]} : vector<32x16xbf16> to vector<32x15xbf16>
    %29 = tpu.concatenate %28, %25 in 1 : vector<32x15xbf16>, vector<32x1xbf16> -> vector<32x16xbf16>
    %30 = tpu.concatenate %27, %24, %29 in 0 : vector<32x16xbf16>, vector<32x16xbf16>, vector<32x16xbf16> -> vector<96x16xbf16>
    %c0_13 = arith.constant 0 : index
    %c0_14 = arith.constant 0 : index
    %31 = vector.load %arg3[%c0_13, %c0_14] : memref<32x96xbf16, #tpu.memory_space<vmem>>, vector<32x96xbf16>
    %cst_15 = arith.constant dense<0.000000e+00> : vector<32x16xf32>
    %32 = tpu.matmul %31, %30, %cst_15 {dimension_numbers = #tpu.dot_dimension_numbers<[1], [0], [0], [1], [0, 0, 1, 1], [], []>} : vector<32x96xbf16>, vector<96x16xbf16>, vector<32x16xf32> -> vector<32x16xf32>
    %c0_16 = arith.constant 0 : index
    %c0_17 = arith.constant 0 : index
    %33 = vector.load %arg7[%c0_16, %c0_17] : memref<32x1xf32, #tpu.memory_space<vmem>>, vector<32x1xf32>
    %34 = vector.broadcast %33 : vector<32x1xf32> to vector<32x16xf32>
    %35 = arith.mulf %32, %34 : vector<32x16xf32>
    %c0_18 = arith.constant 0 : index
    %c0_19 = arith.constant 0 : index
    %36 = vector.load %arg8[%c0_18, %c0_19] : memref<32x1xf32, #tpu.memory_space<vmem>>, vector<32x1xf32>
    %37 = vector.broadcast %36 : vector<32x1xf32> to vector<32x16xf32>
    %38 = arith.addf %35, %37 : vector<32x16xf32>
    %cst_20 = arith.constant dense<0.000000e+00> : vector<32xf32>
    %39 = vector.multi_reduction <add>, %38, %cst_20 [1] : vector<32x16xf32> to vector<32xf32>
    %40 = vector.shape_cast %39 : vector<32xf32> to vector<32x1xf32>
    %cst_21 = arith.constant 1.600000e+01 : f32
    %41 = vector.broadcast %cst_21 : f32 to vector<32x1xf32>
    %42 = arith.divf %40, %41 : vector<32x1xf32>
    %cst_22 = arith.constant dense<0xFF800000> : vector<32xf32>
    %43 = vector.multi_reduction <maximumf>, %38, %cst_22 [1] : vector<32x16xf32> to vector<32xf32>
    %44 = vector.shape_cast %43 : vector<32xf32> to vector<32x1xf32>
    %45 = tpu.concatenate %42, %44 in 1 : vector<32x1xf32>, vector<32x1xf32> -> vector<32x2xf32>
    %c0_23 = arith.constant 0 : index
    %c0_24 = arith.constant 0 : index
    %46 = vector.load %arg9[%c0_23, %c0_24] : memref<2x32xf32, #tpu.memory_space<vmem>>, vector<2x32xf32>
    %cst_25 = arith.constant dense<0.000000e+00> : vector<2x2xf32>
    %47 = tpu.matmul %46, %45, %cst_25 {dimension_numbers = #tpu.dot_dimension_numbers<[1], [0], [0], [1], [0, 0, 1, 1], [], []>} : vector<2x32xf32>, vector<32x2xf32>, vector<2x2xf32> -> vector<2x2xf32>
    %cst_26 = arith.constant 0.000000e+00 : f32
    %48 = vector.broadcast %cst_26 : f32 to vector<2x2xf32>
    %49 = arith.maximumf %47, %48 : vector<2x2xf32>
    %c0_27 = arith.constant 0 : index
    %c0_28 = arith.constant 0 : index
    %50 = vector.load %arg10[%c0_27, %c0_28] : memref<32x2xf32, #tpu.memory_space<vmem>>, vector<32x2xf32>
    %cst_29 = arith.constant dense<0.000000e+00> : vector<32x2xf32>
    %51 = tpu.matmul %50, %49, %cst_29 {dimension_numbers = #tpu.dot_dimension_numbers<[1], [0], [0], [1], [0, 0, 1, 1], [], []>} : vector<32x2xf32>, vector<2x2xf32>, vector<32x2xf32> -> vector<32x2xf32>
    %52 = vector.extract_strided_slice %51 {offsets = [0, 0], sizes = [32, 1], strides = [1, 1]} : vector<32x2xf32> to vector<32x1xf32>
    %53 = vector.extract_strided_slice %51 {offsets = [0, 1], sizes = [32, 1], strides = [1, 1]} : vector<32x2xf32> to vector<32x1xf32>
    %54 = arith.addf %52, %53 : vector<32x1xf32>
    %55 = arith.negf %54 : vector<32x1xf32>
    %56 = math.exp %55 : vector<32x1xf32>
    %cst_30 = arith.constant 1.000000e+00 : f32
    %57 = vector.broadcast %cst_30 : f32 to vector<32x1xf32>
    %58 = arith.addf %57, %56 : vector<32x1xf32>
    %59 = arith.divf %57, %58 : vector<32x1xf32>
    %60 = vector.broadcast %59 : vector<32x1xf32> to vector<32x16xf32>
    %61 = arith.mulf %38, %60 : vector<32x16xf32>
    %62 = arith.addf %61, %23 : vector<32x16xf32>
    %cst_31 = arith.constant 0.000000e+00 : f32
    %63 = vector.broadcast %cst_31 : f32 to vector<32x16xf32>
    %64 = arith.maximumf %62, %63 : vector<32x16xf32>
    %c0_32 = arith.constant 0 : index
    %c0_33 = arith.constant 0 : index
    %c0_34 = arith.constant 0 : index
    %65 = vector.load %arg11[%c0_32, %c0_33, %c0_34] : memref<1x32x16xf32, #tpu.memory_space<vmem>>, vector<1x32x16xf32>
    %66 = vector.shape_cast %65 : vector<1x32x16xf32> to vector<32x16xf32>
    %67 = vector.shape_cast %64 : vector<32x16xf32> to vector<1x32x16xf32>
    tpu.vector_store %arg11[%c0_32, %c0_33, %c0_34], %67 {strides = array<i32>} : memref<1x32x16xf32, #tpu.memory_space<vmem>>, vector<1x32x16xf32>,
    return
  }
  func.func @transform_0(%arg0: i32) -> (i32, i32, i32) {
    %c0_i32 = arith.constant 0 : i32
    %c0_i32_0 = arith.constant 0 : i32
    %c0_i32_1 = arith.constant 0 : i32
    return %arg0, %c0_i32, %c0_i32_0 : i32, i32, i32
  }
  func.func @transform_1(%arg0: i32) -> (i32, i32) {
    %c0_i32 = arith.constant 0 : i32
    %c0_i32_0 = arith.constant 0 : i32
    %c0_i32_1 = arith.constant 0 : i32
    return %c0_i32, %c0_i32_0 : i32, i32
  }
  func.func @transform_2(%arg0: i32) -> (i32, i32) {
    %c0_i32 = arith.constant 0 : i32
    %c0_i32_0 = arith.constant 0 : i32
    %c0_i32_1 = arith.constant 0 : i32
    return %c0_i32, %c0_i32_0 : i32, i32
  }
  func.func @transform_3(%arg0: i32) -> (i32, i32) {
    %c0_i32 = arith.constant 0 : i32
    %c0_i32_0 = arith.constant 0 : i32
    %c0_i32_1 = arith.constant 0 : i32
    return %c0_i32, %c0_i32_0 : i32, i32
  }
  func.func @transform_4(%arg0: i32) -> (i32, i32) {
    %c0_i32 = arith.constant 0 : i32
    %c0_i32_0 = arith.constant 0 : i32
    %c0_i32_1 = arith.constant 0 : i32
    return %c0_i32, %c0_i32_0 : i32, i32
  }
  func.func @transform_5(%arg0: i32) -> (i32, i32) {
    %c0_i32 = arith.constant 0 : i32
    %c0_i32_0 = arith.constant 0 : i32
    %c0_i32_1 = arith.constant 0 : i32
    return %c0_i32, %c0_i32_0 : i32, i32
  }
  func.func @transform_6(%arg0: i32) -> (i32, i32) {
    %c0_i32 = arith.constant 0 : i32
    %c0_i32_0 = arith.constant 0 : i32
    %c0_i32_1 = arith.constant 0 : i32
    return %c0_i32, %c0_i32_0 : i32, i32
  }
  func.func @transform_7(%arg0: i32) -> (i32, i32) {
    %c0_i32 = arith.constant 0 : i32
    %c0_i32_0 = arith.constant 0 : i32
    %c0_i32_1 = arith.constant 0 : i32
    return %c0_i32, %c0_i32_0 : i32, i32
  }
  func.func @transform_8(%arg0: i32) -> (i32, i32) {
    %c0_i32 = arith.constant 0 : i32
    %c0_i32_0 = arith.constant 0 : i32
    %c0_i32_1 = arith.constant 0 : i32
    return %c0_i32, %c0_i32_0 : i32, i32
  }
  func.func @transform_9(%arg0: i32) -> (i32, i32) {
    %c0_i32 = arith.constant 0 : i32
    %c0_i32_0 = arith.constant 0 : i32
    %c0_i32_1 = arith.constant 0 : i32
    return %c0_i32, %c0_i32_0 : i32, i32
  }
  func.func @transform_10(%arg0: i32) -> (i32, i32, i32) {
    %c0_i32 = arith.constant 0 : i32
    %c0_i32_0 = arith.constant 0 : i32
    %c0_i32_1 = arith.constant 0 : i32
    return %arg0, %c0_i32, %c0_i32_0 : i32, i32, i32
  }
}

</mosaic_0001>

<bundles_post_ra>
// kernel: hrrp_residual_pallas.1
= control target key start
LH: loop header
LB: loop body
LE: loop exit
PB: predicated region body
PF: predicated region fallthrough
CT: control target
= control target key end

     0   :  { %s1299_s13 = smov 0   ;;  %s1487_s0 = inlined_call_operand.vmem [shape: f32[2,4,16], index: 0, kind: input, shape index: {}]   ;;  %s1488_s1 = inlined_call_operand.vmem [shape: bf16[64,12], index: 1, kind: input, shape index: {}]   ;;  %s1489_s2 = inlined_call_operand.vmem [shape: bf16[32,96], index: 2, kind: input, shape index: {}]   ;;  %s1490_s3 = inlined_call_operand.vmem [shape: f32[32,1], index: 3, kind: input, shape index: {}]   ;;  %s1491_s4 = inlined_call_operand.vmem [shape: f32[32,1], index: 4, kind: input, shape index: {}]   ;;  %s1492_s5 = inlined_call_operand.vmem [shape: f32[32,1], index: 5, kind: input, shape index: {}]   ;;  %s1493_s6 = inlined_call_operand.vmem [shape: f32[32,1], index: 6, kind: input, shape index: {}]   ;;  %s1494_s7 = inlined_call_operand.vmem [shape: f32[32,1], index: 7, kind: input, shape index: {}]   ;;  %s1495_s8 = inlined_call_operand.vmem [shape: f32[2,32], index: 8, kind: input, shape index: {}]   ;;  %s1496_s9 = inlined_call_operand.vmem [shape: f32[32,2], index: 9, kind: input, shape index: {}]   ;;  %s1497_s10 = inlined_call_operand.vmem [shape: f32[2,32,16], index: 10, kind: output, shape index: {}]  }
   0x1 LB: > { %s1078_s14 = sadd.s32 4294967295, %s1236_s13   ;;  %p1082_p0 = scmp.ge.s32.totalorder %s1236_s13, 1  ;;  %s1236_s13 = sphi %s1299_s13, %s20_s13  }
   0x2   : > { %p311_p1 = scmp.lt.s32.totalorder %s1236_s13, 3 }
   0x4   : > { %p312_p2 = pnand %p1082_p0, %p311_p1 }
   0x5   : > { %p348_p3 = scmp.lt.s32.totalorder (!%p312_p2), %s1078_s14, 1  ;;  %v1208_v0 = vld [vmem:[%s1488_s1] sm:$0xff] (!%p312_p2)   ;;  %vm409_vm0 = vcmask (!%p312_p2), 97280   ;;  %v1238_v4 = vmov (!%p312_p2), 0   ;;  %s1239_s23 = smov (!%p312_p2), 127   ;;  %v491_v5 = vld [vmem:[%s1491_s4 + $0x8] sm:$0xff] (!%p312_p2) }
   0x6   : > { %315 = sbr.rel (%p312_p2) target bundleno = 1597 (0x63d), region = 60  ;;  %1140 = vmatprep.mubr.msk.bf16.mxu0 (!%p312_p2), %vm409_vm0, %v1208_v0  ;;  %v490_v3 = vld [vmem:[%s1491_s4] sm:$0xff] (!%p312_p2)  ;;  %1206 = vset.pattern.permute.xlu1 (!%p312_p2), %v1238_v4  ;;  %s1240_s26 = smov (!%p312_p2), 1   ;;  %v519_v6 = vld [vmem:[%s1492_s5 + $0x8] sm:$0xff] (!%p312_p2)  ;;  %v492_v8 = vld [vmem:[%s1491_s4 + $0x10] sm:$0xff] (!%p312_p2)  ;;  %vm369_vm1 = vcmask (!%p312_p2), 121856  }
   0x7   : > { %1207 = vset.pattern.permute.xlu0 (!%p312_p2), %v1238_v4  ;;  %496 = vperm.xlu1 (!%p312_p2), %1206, %v490_v3   ;;  %v518_v7 = vld [vmem:[%s1492_s5] sm:$0xff] (!%p312_p2)  ;;  %v493_v9 = vld [vmem:[%s1491_s4 + $0x18] sm:$0xff] (!%p312_p2)  ;;  %v520_v10 = vld [vmem:[%s1492_s5 + $0x10] sm:$0xff] (!%p312_p2)  ;;  %vm363_vm2 = vcmask (!%p312_p2), 7168   ;;  %vm375_vm3 = vcmask (!%p312_p2), 1041408   ;;  %vm378_vm4 = vcmask (!%p312_p2), 1043456  }
   0x8   : > { %v521_v11 = vld [vmem:[%s1492_s5 + $0x18] sm:$0xff] (!%p312_p2)  ;;  %vm422_vm5 = vcmask (!%p312_p2), 1045504   ;;  %v1209_v21 = vld [vmem:[%s1488_s1 + $0x8] sm:$0xff] (!%p312_p2)   ;;  %v672_v49 = vld [vmem:[%s1493_s6] sm:$0xff] (!%p312_p2)  ;;  %vm616_vm6 = vcmask (!%p312_p2), 785408   ;;  %vm728_vm8 = vcmask (!%p312_p2), 130048  }
   0x9   : > { %v673_v48 = vld [vmem:[%s1493_s6 + $0x8] sm:$0xff] (!%p312_p2)  ;;  %v1210_v51 = vld [vmem:[%s1489_s2] sm:$0xff] (!%p312_p2)   ;;  %v675_v53 = vld [vmem:[%s1493_s6 + $0x18] sm:$0xff] (!%p312_p2)  ;;  %vm1242_vm9 = vmmov (!%p312_p2), 0   ;;  %vm763_vm10 = vcmask (!%p312_p2), 261120   ;;  %vm842_vm11 = vcmask (!%p312_p2), 15360  }
   0xa   : > { %v701_v50 = vld [vmem:[%s1494_s7 + $0x8] sm:$0xff] (!%p312_p2)  ;;  %v700_v52 = vld [vmem:[%s1494_s7] sm:$0xff] (!%p312_p2)  ;;  %1160 = vmatprep.mubr.msk.bf16.mxu1 (!%p312_p2), %vm616_vm6, %v1210_v51  ;;  %v674_v54 = vld [vmem:[%s1493_s6 + $0x10] sm:$0xff] (!%p312_p2) }
   0xb   : > { %501 = vperm.xlu1 (!%p312_p2), %1206, %v491_v5   ;;  %v703_v55 = vld [vmem:[%s1494_s7 + $0x18] sm:$0xff] (!%p312_p2)  ;;  %v702_v56 = vld [vmem:[%s1494_s7 + $0x10] sm:$0xff] (!%p312_p2)  ;;  %vm1096_vm7 = vmneg (!%p312_p2), %vm363_vm2 }
   0xc   : > { %v1211_v63 = vld [vmem:[%s1489_s2 + $0x8] sm:$0xff] (!%p312_p2)  }
   0xd   : > { %s1499_s14 = smov (!%p348_p3, %s1078_s14), 1 }
   0xe   : > { %s1083_s15 = sshll.u32 %s1499_s14, 2 }
   0xf   : > { %s351_s20 = scalar_lea.vmem %s1487_s0, %s1083_s15  ;;  %529 = vperm.xlu1 %1206, %v519_v6  }
  0x10   : > { %v358_v1 = vld [vmem:[%s351_s20] sm:$0xf] }
  0x11   : > { %v359_v2 = vpack.c.bf16 %v358_v1, %v358_v1 }
  0x13   : > { %367 = vrot.lane.b32.xlu0 %v359_v2, %s1239_s23  ;;  %506 = vperm.xlu1 %1206, %v492_v8   ;;  %v372_v14 = vrot.slane %v359_v2, 6 }
  0x17   : > { %361 = vrot.lane.b32.xlu0 %v359_v2, %s1240_s26  ;;  %534 = vperm.xlu1 %1206, %v520_v10  }
  0x1b   : > { %524 = vperm.xlu0 %1207, %v518_v7  }
  0x1f   : > { %511 = vperm.xlu0 %1207, %v493_v9  }
  0x23   : > { %539 = vperm.xlu0 %1207, %v521_v11  }
  0x85   : > { %v368_v12 = vpop.permute.xlu0 %367 }
  0x86   : > { %v371_v13 = vsel %vm369_vm1, %v368_v12, 0  ;;  %v497_v22 = vpop.permute.xlu1 %496 }
  0x87   : > { %v374_v16 = vrot.slane %v371_v13, 4 }
  0x89   : > { %v362_v15 = vpop.permute.xlu0 %361 }
  0x8a   : > { %v366_v17 = vsel %vm363_vm2, 0, %v362_v15  ;;  %v502_v23 = vpop.permute.xlu1 %501 }
  0x8b   : > { %v377_v18 = vsel %vm375_vm3, %v366_v17, %v372_v14 }
  0x8c   : > { %v380_v19 = vsel %vm378_vm4, %v377_v18, %v374_v16 }
  0x8d   : > { %1189 = vmatprep.subr.msk.bf16.mxu0 %vm422_vm5, %v380_v19  ;;  %v423_v20 = vsel %vm422_vm5, %v380_v19, 0 }
  0x8e   : > { %1139 = vmatpush3.bf16.msra.mxu0 %v423_v20  ;;  %v530_v24 = vpop.permute.xlu1 %529 }
  0x91   : > { %1141 = vmatmul.mubr.msk.bf16.vlgmr.msra.gmra.mrb[0].mxu0 %vm409_vm0, %v1209_v21 }
  0x92   : > { %v507_v26 = vpop.permute.xlu1 %506 }
  0x96   : > { %v535_v31 = vpop.permute.xlu1 %534 }
  0x9a   : > { %v525_v25 = vpop.permute.xlu0 %524 }
  0x9e   : > { %v512_v27 = vpop.permute.xlu0 %511 }
  0xa2   : > { %v540_v37 = vpop.permute.xlu0 %539 }
 0x164   : > { %v1142_v28 = vpop.f32.mrb[0].mxu0 }
 0x165   : > { %v516_v29 = vmul.f32 %v1142_v28, %v507_v26  ;;  %v459_v30 = vpop.f32.mrb[1].mxu0  ;;  %v1212_v28 = vld [vmem:[%s1488_s1 + $0x10] sm:$0xff]  }
 0x166   : > { %v514_v32 = vmul.f32 %v497_v22, %v459_v30  ;;  %v1143_v33 = vpop.f32.mrb[2].mxu0  ;;  %1144 = vmatprep.mubr.msk.bf16.mxu0 %vm409_vm0, %v1212_v28  ;;  %v1241_v30 = vmov 0.0|0.0  }
 0x167   : > { %v544_v34 = vadd.f32 %v535_v31, %v516_v29  ;;  %v517_v35 = vmul.f32 %v1143_v33, %v512_v27  ;;  %v462_v36 = vpop.f32.mrb[3].mxu0  ;;  %v1213_v29 = vld [vmem:[%s1488_s1 + $0x18] sm:$0xff]   ;;  %1183 = vmatprep.subr.bf16.mxu0 %v1241_v30  ;;  %v1243_v31 = vmov 0.0  }
 0x168   : > { %v542_v38 = vadd.f32 %v525_v25, %v514_v32  ;;  %v515_v39 = vmul.f32 %v502_v23, %v462_v36  ;;  %1145 = vmatmul.mubr.msk.bf16.gmra.mrb[4].mxu0 %vm409_vm0, %v1213_v29 }
 0x169   : > { %v545_v40 = vadd.f32 %v540_v37, %v517_v35  ;;  %v548_v42 = vmax.f32 %v544_v34, 0.0  ;;  %1172 = vmatprep.mubr.msk.f32.mxu0 %vm1242_vm9, %v1243_v31 }
 0x16a   : > { %v543_v41 = vadd.f32 %v530_v24, %v515_v39  ;;  %v546_v44 = vmax.f32 %v542_v38, 0.0 }
 0x16b   : > { %v549_v43 = vmax.f32 %v545_v40, 0.0 }
 0x16c   : > { %v547_v45 = vmax.f32 %v543_v41, 0.0 }
 0x16d   : > { %v579_v46 = vpack.c.bf16 %v549_v43, %v548_v42 }
 0x16e   : > { %v578_v47 = vpack.c.bf16 %v547_v45, %v546_v44 }
 0x16f   : > { %584 = vrot.lane.b32.xlu0 %v579_v46, %s1240_s26 }
 0x170   : > { %582 = vrot.lane.b32.xlu1 %v578_v47, %s1240_s26 }
 0x173   : > { %594 = vrot.lane.b32.xlu0 %v579_v46, %s1239_s23 }
 0x174   : > { %592 = vrot.lane.b32.xlu1 %v578_v47, %s1239_s23 }
 0x177   : > { %683 = vperm.xlu0 %1207, %v673_v48  }
 0x178   : > { %678 = vperm.xlu1 %1206, %v672_v49  }
 0x17b   : > { %711 = vperm.xlu0 %1207, %v701_v50   ;;  %v762_v50 = vld [vmem:[%s1495_s8] sm:$0x3] }
 0x17c   : > { %706 = vperm.xlu1 %1206, %v700_v52  }
 0x17f   : > { %693 = vperm.xlu0 %1207, %v675_v53  }
 0x180   : > { %688 = vperm.xlu1 %1206, %v674_v54  }
 0x183   : > { %721 = vperm.xlu0 %1207, %v703_v55   ;;  %v838_v55 = vld [vmem:[%s1496_s9] sm:$0xff] }
 0x184   : > { %716 = vperm.xlu1 %1206, %v702_v56  }
 0x1e1   : > { %v585_v58 = vpop.permute.xlu0 %584 }
 0x1e2   : > { %v583_v57 = vpop.permute.xlu1 %582 }
 0x1e3   : > { %1148 = vmatprep.subr.msk.bf16.mxu1 %vm1096_vm7, %v583_v57 }
 0x1e4   : > { %1149 = vmatpush3.bf16.msk.msra.mxu1 %vm1096_vm7, %v583_v57 }
 0x1e5   : > { %1150 = vmatprep.subr.msk.bf16.mxu1 %vm1096_vm7, %v585_v58  ;;  %v595_v61 = vpop.permute.xlu0 %594 }
 0x1e6   : > { %v593_v59 = vpop.permute.xlu1 %592  ;;  %v600_v62 = vsel %vm369_vm1, %v595_v61, 0 }
 0x1e7   : > { %v597_v60 = vsel %vm369_vm1, %v593_v59, 0 }
 0x1e8   : > { %1151 = vmatpush3.bf16.msk.msra.mxu1 %vm1096_vm7, %v585_v58 }
 0x1e9   : > { %1152 = vmatprep.subr.bf16.mxu1 %v578_v47 }
 0x1ec   : > { %1153 = vmatpush3.bf16.msra.mxu1 %v578_v47 }
 0x1ed   : > { %1154 = vmatprep.subr.bf16.mxu1 %v579_v46 }
 0x1f0   : > { %1155 = vmatpush3.bf16.msra.mxu1 %v579_v46 }
 0x1f1   : > { %1190 = vmatprep.subr.msk.bf16.mxu1 %vm369_vm1, %v593_v59  ;;  %v839_v59 = vld [vmem:[%s1496_s9 + $0x8] sm:$0xff] }
 0x1f4   : > { %1157 = vmatpush3.bf16.msra.mxu1 %v597_v60  ;;  %v840_v60 = vld [vmem:[%s1496_s9 + $0x10] sm:$0xff] }
 0x1f5   : > { %1191 = vmatprep.subr.msk.bf16.mxu1 %vm369_vm1, %v595_v61  ;;  %v841_v61 = vld [vmem:[%s1496_s9 + $0x18] sm:$0xff] }
 0x1f6   : > { %v684_v0 = vpop.permute.xlu0 %683 }
 0x1f7   : > { %v679_v1 = vpop.permute.xlu1 %678 }
 0x1f8   : > { %1159 = vmatpush3.bf16.msra.mxu1 %v600_v62 }
 0x1fa   : > { %v712_v2 = vpop.permute.xlu0 %711 }
 0x1fb   : > { %1161 = vmatmul.mubr.msk.bf16.vlgmr.msra.gmra.mrb[0].mxu1 %vm616_vm6, %v1211_v63  ;;  %v707_v3 = vpop.permute.xlu1 %706 }
 0x1fe   : > { %v694_v4 = vpop.permute.xlu0 %693 }
 0x1ff   : > { %v689_v9 = vpop.permute.xlu1 %688 }
 0x202   : > { %v722_v14 = vpop.permute.xlu0 %721 }
 0x203   : > { %v717_v20 = vpop.permute.xlu1 %716 }
 0x23b   : > { %v1430_v51 = vpop.f32.mrb[4].mxu0 }
 0x23c   : > { %v1432_v52 = vpop.f32.mrb[5].mxu0 }
 0x23d   : > { %v1434_v53 = vpop.f32.mrb[6].mxu0 }
 0x23e   : > { %v1436_v54 = vpop.f32.mrb[7].mxu0 }
 0x2ce   : > { %v1162_v5 = vpop.f32.mrb[0].mxu1 }
 0x2cf   : > { %v657_v6 = vpop.f32.mrb[1].mxu1  ;;  %v698_v15 = vmul.f32 %v1162_v5, %v689_v9  ;;  %v552_v5 = vld [vmem:[%s1490_s3 + $0x10] sm:$0xff] }
 0x2d0   : > { %v696_v7 = vmul.f32 %v679_v1, %v657_v6  ;;  %v1163_v8 = vpop.f32.mrb[2].mxu1 }
 0x2d1   : > { %v699_v10 = vmul.f32 %v1163_v8, %v694_v4  ;;  %v660_v11 = vpop.f32.mrb[3].mxu1  ;;  %v1401_v21 = vadd.f32 %v717_v20, %v698_v15  ;;  %v553_v4 = vld [vmem:[%s1490_s3 + $0x18] sm:$0xff] }
 0x2d2   : > { %v1391_v12 = vadd.f32 %v707_v3, %v696_v7  ;;  %v697_v13 = vmul.f32 %v684_v0, %v660_v11  ;;  %v550_v3 = vld [vmem:[%s1490_s3] sm:$0xff] }
 0x2d3   : > { %v1393_v16 = vadd.f32 %v722_v14, %v699_v10  ;;  %v735_v25 = vsel %vm728_vm8, %v1401_v21, 0.0  ;;  %v752_v27 = vsel %vm728_vm8, %v1401_v21, -inf }
 0x2d4   : > { %v1395_v17 = vadd.f32 %v712_v2, %v697_v13  ;;  %v746_v18 = vsel %vm728_vm8, %v1391_v12, -inf  ;;  %v729_v19 = vsel %vm728_vm8, %v1391_v12, 0.0  ;;  %v551_v2 = vld [vmem:[%s1490_s3 + $0x8] sm:$0xff] }
 0x2d5   : > { %747 = vmax.xlane.f32.xlu0 %v746_v18  ;;  %730 = vadd.xlane.f32.xlu1 %v729_v19  ;;  %v738_v23 = vsel %vm728_vm8, %v1393_v16, 0.0  ;;  %v755_v26 = vsel %vm728_vm8, %v1393_v16, -inf }
 0x2d6   : > { %v732_v22 = vsel %vm728_vm8, %v1395_v17, 0.0  ;;  %v749_v24 = vsel %vm728_vm8, %v1395_v17, -inf }
 0x2d9   : > { %733 = vadd.xlane.f32.xlu0 %v732_v22  ;;  %739 = vadd.xlane.f32.xlu1 %v738_v23 }
 0x2dd   : > { %750 = vmax.xlane.f32.xlu1 %v749_v24  ;;  %736 = vadd.xlane.f32.xlu0 %v735_v25 }
 0x2e1   : > { %756 = vmax.xlane.f32.xlu1 %v755_v26  ;;  %753 = vmax.xlane.f32.xlu0 %v752_v27 }
 0x362   : > { %v748_v32 = vpop.xlane.xlu0 %747  ;;  %v731_v33 = vpop.xlane.xlu1 %730 }
 0x363   : > { %v742_v36 = vmul.f32 0.0625, %v731_v33 }
 0x365   : > { %v758_v40 = vsel %vm363_vm2, %v742_v36, %v748_v32 }
 0x366   : > { %v734_v34 = vpop.xlane.xlu0 %733  ;;  %v740_v35 = vpop.xlane.xlu1 %739 }
 0x367   : > { %v743_v37 = vmul.f32 0.0625, %v734_v34  ;;  %v745_v43 = vmul.f32 0.0625, %v740_v35 }
 0x36a   : > { %v737_v38 = vpop.xlane.xlu0 %736  ;;  %v751_v39 = vpop.xlane.xlu1 %750 }
 0x36b   : > { %v759_v41 = vsel %vm363_vm2, %v743_v37, %v751_v39  ;;  %v744_v44 = vmul.f32 0.0625, %v737_v38 }
 0x36c   : > { %v1184_v42 = vpack.c.bf16 %v759_v41, %v758_v40 }
 0x36e   : > { %v754_v45 = vpop.xlane.xlu0 %753  ;;  %1185 = vmatpush3.bf16.msra.mxu0 %v1184_v42  ;;  %v757_v46 = vpop.xlane.xlu1 %756 }
 0x36f   : > { %v760_v47 = vsel %vm363_vm2, %v744_v44, %v754_v45  ;;  %v761_v48 = vsel %vm363_vm2, %v745_v43, %v757_v46  ;;  %1186 = vmatprep.subr.bf16.mxu0 %v1241_v30 }
 0x370   : > { %v1187_v49 = vpack.c.bf16 %v761_v48, %v760_v47 }
 0x372   : > { %1188 = vmatpush3.bf16.msra.mxu0 %v1187_v49 }
 0x375   : > { %1173 = vmatmul.mubr.msk.f32.vlgmr.msra.gmra.mrb[8].mxu0 %vm763_vm10, %v762_v50 }
 0x376   : > { %1177 = vmatprep.mubr.msk.f32.mxu0 %vm842_vm11, %v838_v55 }
 0x448   : > { %v833_v56 = vpop.f32.mrb[8].mxu0 }
 0x449   : > { %v837_v57 = vmax.f32 %v833_v56, 0.0  ;;  %v1174_v58 = vpop.f32.mrb[9].mxu0 }
 0x44b   : > { %1175 = vmatprep.subr.msk.mxu0 %vm375_vm3, %v837_v57 }
 0x44c   : > { %1176 = vmatpush3.msk.msra.mxu0 %vm375_vm3, %v837_v57 }
 0x44d   : > { %1178 = vmatmul.mubr.msk.f32.vlgmr.msra.gmra.mrb[10].mxu0 %vm842_vm11, %v839_v59 }
 0x44e   : > { %1180 = vmatprep.mubr.msk.f32.mxu0 %vm842_vm11, %v840_v60 }
 0x451   : > { %1181 = vmatmul.mubr.msk.f32.gmra.mrb[12].mxu0 %vm842_vm11, %v841_v61 }
 0x520   : > { %v1179_v62 = vpop.f32.mrb[10].mxu0 }
 0x521   : > { %949 = vrot.lane.b32.xlu1 %v1179_v62, %s1239_s23  ;;  %v924_v63 = vpop.f32.mrb[11].mxu0 }
 0x522   : > { %947 = vrot.lane.b32.xlu0 %v924_v63, %s1239_s23 }
 0x524   : > { %v1182_v0 = vpop.f32.mrb[12].mxu0 }
 0x525   : > { %v934_v1 = vpop.f32.mrb[13].mxu0 }
 0x526   : > { %953 = vrot.lane.b32.xlu0 %v1182_v0, %s1239_s23  ;;  %951 = vrot.lane.b32.xlu1 %v934_v1, %s1239_s23  ;;  %s1114_s23 = sshll.u32 %s1499_s14, 5 }
 0x527   : > { %s356_s16 = scalar_lea.vmem %s1497_s10, %s1114_s23 }
 0x52a   : > { %561 = vperm.xlu0 %1207, %v551_v2   ;;  %556 = vperm.xlu1 %1206, %v550_v3  }
 0x52e   : > { %571 = vperm.xlu0 %1207, %v553_v4   ;;  %566 = vperm.xlu1 %1206, %v552_v5  }
 0x593   : > { %v950_v6 = vpop.permute.xlu1 %949 }
 0x594   : > { %v960_v7 = vadd.f32 %v1179_v62, %v950_v6  ;;  %v948_v8 = vpop.permute.xlu0 %947 }
 0x595   : > { %v959_v9 = vadd.f32 %v948_v8, %v924_v63 }
 0x596   : > { %v1109_v10 = vmul.f32 -1.442695, %v960_v7 }
 0x597   : > { %v1108_v11 = vmul.f32 -1.442695, %v959_v9 }
 0x598   : > { %1214 = vpow2.f32 %v1109_v10  ;;  %v954_v13 = vpop.permute.xlu0 %953  ;;  %v952_v14 = vpop.permute.xlu1 %951 }
 0x599   : > { %1216 = vpow2.f32 %v1108_v11  ;;  %v962_v15 = vadd.f32 %v1182_v0, %v954_v13  ;;  %v961_v18 = vadd.f32 %v952_v14, %v934_v1 }
 0x59b   : > { %v1111_v19 = vmul.f32 -1.442695, %v962_v15  ;;  %v1110_v20 = vmul.f32 -1.442695, %v961_v18 }
 0x59d   : > { %1218 = vpow2.f32 %v1111_v19 }
 0x59e   : > { %1220 = vpow2.f32 %v1110_v20 }
 0x5a2   : > { %v1215_v22 = vpop.eup %1214 }
 0x5a3   : > { %v1217_v23 = vpop.eup %1216  ;;  %v976_v24 = vadd.f32 1.0, %v1215_v22 }
 0x5a4   : > { %v975_v25 = vadd.f32 1.0, %v1217_v23 }
 0x5a5   : > { %1222 = vrcp.f32 %v976_v24 }
 0x5a6   : > { %1224 = vrcp.f32 %v975_v25 }
 0x5a7   : > { %v1219_v26 = vpop.eup %1218 }
 0x5a8   : > { %v1221_v27 = vpop.eup %1220  ;;  %v978_v28 = vadd.f32 1.0, %v1219_v26 }
 0x5a9   : > { %v977_v29 = vadd.f32 1.0, %v1221_v27  ;;  %v562_v34 = vpop.permute.xlu0 %561  ;;  %v557_v35 = vpop.permute.xlu1 %556 }
 0x5aa   : > { %1226 = vrcp.f32 %v978_v28  ;;  %v575_v39 = vadd.f32 %v562_v34, %v1436_v54  ;;  %v574_v42 = vadd.f32 %v557_v35, %v1432_v52 }
 0x5ab   : > { %1228 = vrcp.f32 %v977_v29 }
 0x5ad   : > { %v572_v36 = vpop.permute.xlu0 %571  ;;  %v567_v37 = vpop.permute.xlu1 %566 }
 0x5ae   : > { %v577_v48 = vadd.f32 %v1434_v53, %v572_v36 }
 0x5af   : > { %v1223_v30 = vpop.eup %1222 }
 0x5b0   : > { %v1225_v31 = vpop.eup %1224  ;;  %994 = vperm.xlu0 %1207, %v1223_v30  }
 0x5b1   : > { %989 = vperm.xlu1 %1206, %v1225_v31  }
 0x5b4   : > { %v1227_v32 = vpop.eup %1226 }
 0x5b5   : > { %v1229_v33 = vpop.eup %1228  ;;  %1004 = vperm.xlu0 %1207, %v1227_v32  }
 0x5b6   : > { %999 = vperm.xlu1 %1206, %v1229_v33  }
 0x62f   : > { %v995_v38 = vpop.permute.xlu0 %994 }
 0x630   : > { %v1008_v40 = vmul.f32 %v995_v38, %v1395_v17  ;;  %v990_v41 = vpop.permute.xlu1 %989  ;;  %v576_v17 = vadd.f32 %v1430_v51, %v567_v37 }
 0x631   : > { %v1007_v43 = vmul.f32 %v990_v41, %v1391_v12 }
 0x632   : > { %v1012_v44 = vadd.f32 %v1008_v40, %v575_v39 }
 0x633   : > { %v1011_v45 = vadd.f32 %v1007_v43, %v574_v42 }
 0x634   : > { %v1016_v46 = vmax.f32 %v1012_v44, 0.0  ;;  %v1005_v47 = vpop.permute.xlu0 %1004 }
 0x635   : > { %v1015_v49 = vmax.f32 %v1011_v45, 0.0  ;;  %v1010_v50 = vmul.f32 %v1005_v47, %v1393_v16  ;;  %v1000_v54 = vpop.permute.xlu1 %999 }
 0x636   : > { %1020 = vst.msk [vmem:[%s356_s16 + $0x8] sm:$0xff] %vm728_vm8, %v1016_v46  ;;  %v1009_v12 = vmul.f32 %v1000_v54, %v1401_v21 }
 0x637   : > { %1019 = vst.msk [vmem:[%s356_s16] sm:$0xff] %vm728_vm8, %v1015_v49  ;;  %v1014_v52 = vadd.f32 %v1010_v50, %v577_v48 }
 0x638   : > { %v1013_v55 = vadd.f32 %v1009_v12, %v576_v17 }
 0x639   : > { %v1018_v56 = vmax.f32 %v1014_v52, 0.0 }
 0x63a   : > { %v1017_v57 = vmax.f32 %v1013_v55, 0.0 }
 0x63b   : > { %1022 = vst.msk [vmem:[%s356_s16 + $0x18] sm:$0xff] %vm728_vm8, %v1018_v56 }
 0x63c   : > { %1021 = vst.msk [vmem:[%s356_s16 + $0x10] sm:$0xff] %vm728_vm8, %v1017_v57 }
 0x63d PF: > { %s20_s13 = sadd.s32 1, %s1236_s13  }
 0x63e   : > { %p17_p4 = scmp.ge.s32.totalorder %s20_s13, 4  }
 0x640   :  { %19 = sbr.rel (!%p17_p4) target bundleno = 1 (0x1), region = 90 }

</bundles_post_ra>
